<compile_context>
chip_gen: v6e
topology: v6e:2x2x1
jax: 0.10.0
libtpu: 0.0.40
codegen_flags: <defaults>
</compile_context>

<pallas_src>
import jax
import jax.numpy as jnp
import numpy as np
from jax.experimental import pallas as pl
from jax.experimental.pallas import tpu as pltpu


def _round_up(x, m):
    return (x + m - 1) // m * m


def _actor_kernel(x_ref, w_in_ref, w_hid_ref, w_out_ref, bs_ref, out_ref):
    """Fused MLP: (Linear+ReLU) x (1+num_hidden), Linear, tanh, * action_range.

    x_ref     : (BM, in_dim)          bf16, unpadded lanes
    w_in_ref  : (in_dim, Hp)          bf16
    w_hid_ref : (num_hidden, Hp, Hp)  bf16 (stacked hidden weights)
    w_out_ref : (Hp, Op)              bf16
    bs_ref    : (rows8, W)            f32 — rows 0..L-1 biases, row L = scale
    out_ref   : (BM, Op)              bf16, lane-dense
    """
    hp = w_in_ref.shape[1]
    op = w_out_ref.shape[1]
    nh = w_hid_ref.shape[0]
    width = bs_ref.shape[1]
    cdt = w_in_ref.dtype

    def bias_row(r, cols):
        # Full-lane-width row whenever possible keeps the broadcast add
        # lane-dense (pad lanes of the slab are zero).
        if cols == width:
            return bs_ref[r:r + 1, :]
        return bs_ref[r:r + 1, :cols]

    # Input layer: (BM, in_dim) @ (in_dim, Hp).  in_dim stays unpadded — the
    # MXU pads a short contraction internally; avoids 8x input DMA blow-up.
    h = jnp.dot(x_ref[...], w_in_ref[...], preferred_element_type=jnp.float32)
    h = jnp.maximum(h + bias_row(0, hp), 0.0)

    # Hidden layers (statically unrolled; nh is small).
    for i in range(nh):
        h = jnp.dot(h.astype(cdt), w_hid_ref[i],
                    preferred_element_type=jnp.float32)
        h = jnp.maximum(h + bias_row(i + 1, hp), 0.0)

    # Output layer + tanh squashing + action scale (f32 epilogue, bf16 store).
    h = jnp.dot(h.astype(cdt), w_out_ref[...],
                preferred_element_type=jnp.float32)
    h = h + bias_row(nh + 1, op)
    out_ref[...] = (jnp.tanh(h) * bias_row(nh + 2, op)).astype(out_ref.dtype)


def pack_basic_actor_params(params, action_range, compute_dtype=jnp.bfloat16):
    """Pack per-layer (W, b) params + action range into a few padded arrays.

    params: [(W0, b0), ..., (W_{L-1}, b_{L-1})] with W_i of shape (in, out)
            (already transposed relative to torch's nn.Linear.weight).
    """
    n_layers = len(params)
    num_hidden = n_layers - 2
    assert num_hidden >= 1, "expect at least one hidden->hidden layer"

    in_dim = params[0][0].shape[0]
    hid = params[0][0].shape[1]
    out_dim = params[-1][0].shape[1]

    hp = _round_up(hid, 128)
    op = _round_up(out_dim, 128)
    width = max(hp, op)

    def pad2(a, rows, cols):
        a = jnp.asarray(a, jnp.float32)
        return jnp.pad(a, ((0, rows - a.shape[0]), (0, cols - a.shape[1])))

    # Input weight keeps its true (small) contraction dim: see kernel comment.
    w_in = pad2(params[0][0], in_dim, hp).astype(compute_dtype)
    w_hid = jnp.stack(
        [pad2(params[i][0], hp, hp) for i in range(1, 1 + num_hidden)]
    ).astype(compute_dtype)
    w_out = pad2(params[-1][0], hp, op).astype(compute_dtype)

    rows = [jnp.pad(jnp.asarray(b, jnp.float32).reshape(-1),
                    (0, width - b.shape[-1]))
            for _, b in params]
    scale = jnp.asarray(action_range, jnp.float32).reshape(-1)
    rows.append(jnp.pad(scale, (0, width - scale.shape[0])))
    n_rows = _round_up(len(rows), 8)
    bias_scale = jnp.zeros((n_rows, width), jnp.float32)
    bias_scale = bias_scale.at[:len(rows)].set(jnp.stack(rows))

    return dict(w_in=w_in, w_hid=w_hid, w_out=w_out, bias_scale=bias_scale,
                in_dim=in_dim, out_dim=out_dim, hp=hp, op=op)


def _choose_batch_tiling(batch, block_batch):
    """Pick (bm, padded_batch, n_steps): bm is a multiple of 16; once there is
    enough work, use an even number of steps >= 2 so the "parallel" batch axis
    shards across both TensorCores on megacore parts (v7x)."""
    cap = max(16, _round_up(min(block_batch, batch), 16))
    min_split = 128  # below this, grid-step overhead beats the 2nd TC
    if batch <= cap and batch < min_split:
        bm = _round_up(max(batch, 1), 16)
        n_steps = 1
    else:
        n_steps = max(2, -(-batch // cap))
        if n_steps % 2:
            n_steps += 1
        bm = _round_up(-(-batch // n_steps), 16)
    return bm, n_steps * bm, n_steps


def basic_actor_forward(x, packed, *, block_batch=1024):
    """Run the fused actor forward. Returns (batch, out_dim) float32."""
    batch, in_features = x.shape
    in_dim = packed["in_dim"]
    assert in_features == in_dim
    hp, op = packed["hp"], packed["op"]
    w_in, w_hid = packed["w_in"], packed["w_hid"]
    w_out, bias_scale = packed["w_out"], packed["bias_scale"]
    nh = w_hid.shape[0]
    n_bias_rows, width = bias_scale.shape

    bm, bp, n_steps = _choose_batch_tiling(batch, block_batch)

    # Batch-only pad (one fused jnp.pad); lanes stay at the true in_dim so the
    # input DMA moves only useful bytes.
    xb = x.astype(w_in.dtype)
    if bp != batch:
        xb = jnp.pad(xb, ((0, bp - batch), (0, 0)))

    def _run(param_mode):
        def pspec(shape, imap):
            if param_mode is None:
                return pl.BlockSpec(shape, imap)
            return pl.BlockSpec(shape, imap, pipeline_mode=param_mode)

        return pl.pallas_call(
            _actor_kernel,
            out_shape=jax.ShapeDtypeStruct((bp, op), jnp.bfloat16),
            grid_spec=pltpu.PrefetchScalarGridSpec(
                num_scalar_prefetch=0,
                grid=(n_steps,),
                in_specs=[
                    pl.BlockSpec((bm, in_dim), lambda i: (i, 0)),     # x block
                    pspec((in_dim, hp), lambda i: (0, 0)),            # W_in
                    pspec((nh, hp, hp), lambda i: (0, 0, 0)),         # hidden Ws
                    pspec((hp, op), lambda i: (0, 0)),                # W_out
                    pspec((n_bias_rows, width), lambda i: (0, 0)),    # biases+scale
                ],
                out_specs=pl.BlockSpec((bm, op), lambda i: (i, 0)),
            ),
            compiler_params=pltpu.CompilerParams(
                dimension_semantics=("parallel",)),
            # TODO(synk): if hidden_size grows (>=1024), stream hidden weights
            # per layer with K-tiling and set vmem_limit_bytes explicitly —
            # the stacked resident slab would overrun v7x's 64 MiB VMEM.
        )(xb, w_in, w_hid, w_out, bias_scale)

    # Grid-invariant parameter blocks are revisited every step; single-buffer
    # them so they don't double their VMEM residency.  Fall back to default
    # double buffering if this jax version rejects pipeline_mode here.
    try:
        out_padded = _run(pl.Buffered(1))
    except Exception:
        out_padded = _run(None)

    # Lane-dense bf16 slab -> logical f32 output.
    return out_padded[:batch, :packed["out_dim"]].astype(jnp.float32)


def init_basic_actor_params(key, input_size, hidden_size, output_size,
                            num_hidden=4, larger_weight=0.3):
    """Mirrors BasicActor.__init__: weights ~ N(0, 0.3), biases = 0.
    Weights stored transposed (in, out)."""
    dims = [input_size] + [hidden_size] * (num_hidden + 1) + [output_size]
    params = []
    for i in range(len(dims) - 1):
        key, sub = jax.random.split(key)
        w = larger_weight * jax.random.normal(sub, (dims[i], dims[i + 1]),
                                              dtype=jnp.float32)
        b = jnp.zeros((dims[i + 1],), dtype=jnp.float32)
        params.append((w, b))
    return params


def _reference_forward(x, params, action_range):
    """Plain-JAX reference mirroring the kernel's dtype policy (bf16 weights
    and bf16 activation rounding before each matmul, f32 accumulation and
    f32 epilogue) so the comparison isolates real bugs, not dtype drift."""
    h = x.astype(jnp.float32)
    n = len(params)
    for i, (w, b) in enumerate(params):
        w32 = w.astype(jnp.bfloat16).astype(jnp.float32)
        h32 = h.astype(jnp.bfloat16).astype(jnp.float32)
        h = h32 @ w32 + b
        if i < n - 1:
            h = jnp.maximum(h, 0.0)
    return jnp.tanh(h) * jnp.asarray(action_range, jnp.float32).reshape(1, -1)


if __name__ == "__main__":
    input_size, hidden_size, output_size, num_hidden = 16, 32, 4, 4
    batch = 48

    # action_bound = (low, high); forward uses action_bound[1] as the range.
    high = np.array([1.0, 2.0, 0.5, 1.5], dtype=np.float32)
    action_bound = (-high, high)

    key = jax.random.PRNGKey(0)
    key, xkey = jax.random.split(key)
    x = jax.random.normal(xkey, (batch, input_size), dtype=jnp.float32)

    params = init_basic_actor_params(key, input_size, hidden_size,
                                     output_size, num_hidden)
    packed = pack_basic_actor_params(params, action_bound[1])

    # block_batch=16 just to exercise the multi-step (even) batch grid at toy
    # size; production callers should keep the larger default.
    out = basic_actor_forward(x, packed, block_batch=16)
    out = jax.block_until_ready(out)
    assert out.shape == (batch, output_size)

    ref = jax.block_until_ready(_reference_forward(x, params, action_bound[1]))
    np.testing.assert_allclose(np.asarray(out), np.asarray(ref),
                               rtol=2e-2, atol=2e-2)

    print("KERNEL_OK")
</pallas_src>

<mosaic_0001>
module attributes {stable_mosaic.version = 11 : i64} {
  func.func @_actor_kernel(%arg0: i32, %arg1: memref<16x16xbf16, #tpu.memory_space<vmem>>, %arg2: memref<16x128xbf16, #tpu.memory_space<vmem>>, %arg3: memref<4x128x128xbf16, #tpu.memory_space<vmem>>, %arg4: memref<128x128xbf16, #tpu.memory_space<vmem>>, %arg5: memref<8x128xf32, #tpu.memory_space<vmem>>, %arg6: memref<16x128xbf16, #tpu.memory_space<vmem>>) attributes {dimension_semantics = [#tpu.dimension_semantics<parallel>], iteration_bounds = array<i64: 4>, scalar_prefetch = 0 : i64, scratch_operands = 0 : i64, tpu.core_type = #tpu.core_type<tc>, window_params = [{transform_indices = @transform_0, window_bounds = array<i64: 16, 16>}, {pipeline_mode = #tpu.pipeline_mode<synchronous>, transform_indices = @transform_1, window_bounds = array<i64: 16, 128>}, {pipeline_mode = #tpu.pipeline_mode<synchronous>, transform_indices = @transform_2, window_bounds = array<i64: 4, 128, 128>}, {pipeline_mode = #tpu.pipeline_mode<synchronous>, transform_indices = @transform_3, window_bounds = array<i64: 128, 128>}, {pipeline_mode = #tpu.pipeline_mode<synchronous>, transform_indices = @transform_4, window_bounds = array<i64: 8, 128>}, {transform_indices = @transform_5, window_bounds = array<i64: 16, 128>}]} {
    %c0 = arith.constant 0 : index
    %c0_0 = arith.constant 0 : index
    %0 = vector.load %arg1[%c0, %c0_0] : memref<16x16xbf16, #tpu.memory_space<vmem>>, vector<16x16xbf16>
    %c0_1 = arith.constant 0 : index
    %c0_2 = arith.constant 0 : index
    %1 = vector.load %arg2[%c0_1, %c0_2] : memref<16x128xbf16, #tpu.memory_space<vmem>>, vector<16x128xbf16>
    %cst = arith.constant dense<0.000000e+00> : vector<16x128xf32>
    %2 = tpu.matmul %0, %1, %cst {dimension_numbers = #tpu.dot_dimension_numbers<[1], [0], [0], [1], [0, 0, 1, 1], [], []>} : vector<16x16xbf16>, vector<16x128xbf16>, vector<16x128xf32> -> vector<16x128xf32>
    %c0_3 = arith.constant 0 : index
    %c0_4 = arith.constant 0 : index
    %3 = vector.load %arg5[%c0_3, %c0_4] : memref<8x128xf32, #tpu.memory_space<vmem>>, vector<1x128xf32>
    %4 = vector.broadcast %3 : vector<1x128xf32> to vector<16x128xf32>
    %5 = arith.addf %2, %4 : vector<16x128xf32>
    %cst_5 = arith.constant 0.000000e+00 : f32
    %6 = vector.broadcast %cst_5 : f32 to vector<16x128xf32>
    %7 = arith.maximumf %5, %6 : vector<16x128xf32>
    %8 = arith.truncf %7 : vector<16x128xf32> to vector<16x128xbf16>
    %c0_6 = arith.constant 0 : index
    %c0_7 = arith.constant 0 : index
    %c0_8 = arith.constant 0 : index
    %9 = vector.load %arg3[%c0_6, %c0_7, %c0_8] : memref<4x128x128xbf16, #tpu.memory_space<vmem>>, vector<1x128x128xbf16>
    %10 = vector.shape_cast %9 : vector<1x128x128xbf16> to vector<128x128xbf16>
    %cst_9 = arith.constant dense<0.000000e+00> : vector<16x128xf32>
    %11 = tpu.matmul %8, %10, %cst_9 {dimension_numbers = #tpu.dot_dimension_numbers<[1], [0], [0], [1], [0, 0, 1, 1], [], []>} : vector<16x128xbf16>, vector<128x128xbf16>, vector<16x128xf32> -> vector<16x128xf32>
    %c1 = arith.constant 1 : index
    %c0_10 = arith.constant 0 : index
    %12 = vector.load %arg5[%c1, %c0_10] : memref<8x128xf32, #tpu.memory_space<vmem>>, vector<1x128xf32>
    %13 = vector.broadcast %12 : vector<1x128xf32> to vector<16x128xf32>
    %14 = arith.addf %11, %13 : vector<16x128xf32>
    %cst_11 = arith.constant 0.000000e+00 : f32
    %15 = vector.broadcast %cst_11 : f32 to vector<16x128xf32>
    %16 = arith.maximumf %14, %15 : vector<16x128xf32>
    %17 = arith.truncf %16 : vector<16x128xf32> to vector<16x128xbf16>
    %c1_12 = arith.constant 1 : index
    %c0_13 = arith.constant 0 : index
    %c0_14 = arith.constant 0 : index
    %18 = vector.load %arg3[%c1_12, %c0_13, %c0_14] : memref<4x128x128xbf16, #tpu.memory_space<vmem>>, vector<1x128x128xbf16>
    %19 = vector.shape_cast %18 : vector<1x128x128xbf16> to vector<128x128xbf16>
    %cst_15 = arith.constant dense<0.000000e+00> : vector<16x128xf32>
    %20 = tpu.matmul %17, %19, %cst_15 {dimension_numbers = #tpu.dot_dimension_numbers<[1], [0], [0], [1], [0, 0, 1, 1], [], []>} : vector<16x128xbf16>, vector<128x128xbf16>, vector<16x128xf32> -> vector<16x128xf32>
    %c2 = arith.constant 2 : index
    %c0_16 = arith.constant 0 : index
    %21 = vector.load %arg5[%c2, %c0_16] : memref<8x128xf32, #tpu.memory_space<vmem>>, vector<1x128xf32>
    %22 = vector.broadcast %21 : vector<1x128xf32> to vector<16x128xf32>
    %23 = arith.addf %20, %22 : vector<16x128xf32>
    %cst_17 = arith.constant 0.000000e+00 : f32
    %24 = vector.broadcast %cst_17 : f32 to vector<16x128xf32>
    %25 = arith.maximumf %23, %24 : vector<16x128xf32>
    %26 = arith.truncf %25 : vector<16x128xf32> to vector<16x128xbf16>
    %c2_18 = arith.constant 2 : index
    %c0_19 = arith.constant 0 : index
    %c0_20 = arith.constant 0 : index
    %27 = vector.load %arg3[%c2_18, %c0_19, %c0_20] : memref<4x128x128xbf16, #tpu.memory_space<vmem>>, vector<1x128x128xbf16>
    %28 = vector.shape_cast %27 : vector<1x128x128xbf16> to vector<128x128xbf16>
    %cst_21 = arith.constant dense<0.000000e+00> : vector<16x128xf32>
    %29 = tpu.matmul %26, %28, %cst_21 {dimension_numbers = #tpu.dot_dimension_numbers<[1], [0], [0], [1], [0, 0, 1, 1], [], []>} : vector<16x128xbf16>, vector<128x128xbf16>, vector<16x128xf32> -> vector<16x128xf32>
    %c3 = arith.constant 3 : index
    %c0_22 = arith.constant 0 : index
    %30 = vector.load %arg5[%c3, %c0_22] : memref<8x128xf32, #tpu.memory_space<vmem>>, vector<1x128xf32>
    %31 = vector.broadcast %30 : vector<1x128xf32> to vector<16x128xf32>
    %32 = arith.addf %29, %31 : vector<16x128xf32>
    %cst_23 = arith.constant 0.000000e+00 : f32
    %33 = vector.broadcast %cst_23 : f32 to vector<16x128xf32>
    %34 = arith.maximumf %32, %33 : vector<16x128xf32>
    %35 = arith.truncf %34 : vector<16x128xf32> to vector<16x128xbf16>
    %c3_24 = arith.constant 3 : index
    %c0_25 = arith.constant 0 : index
    %c0_26 = arith.constant 0 : index
    %36 = vector.load %arg3[%c3_24, %c0_25, %c0_26] : memref<4x128x128xbf16, #tpu.memory_space<vmem>>, vector<1x128x128xbf16>
    %37 = vector.shape_cast %36 : vector<1x128x128xbf16> to vector<128x128xbf16>
    %cst_27 = arith.constant dense<0.000000e+00> : vector<16x128xf32>
    %38 = tpu.matmul %35, %37, %cst_27 {dimension_numbers = #tpu.dot_dimension_numbers<[1], [0], [0], [1], [0, 0, 1, 1], [], []>} : vector<16x128xbf16>, vector<128x128xbf16>, vector<16x128xf32> -> vector<16x128xf32>
    %c4 = arith.constant 4 : index
    %c0_28 = arith.constant 0 : index
    %39 = vector.load %arg5[%c4, %c0_28] : memref<8x128xf32, #tpu.memory_space<vmem>>, vector<1x128xf32>
    %40 = vector.broadcast %39 : vector<1x128xf32> to vector<16x128xf32>
    %41 = arith.addf %38, %40 : vector<16x128xf32>
    %cst_29 = arith.constant 0.000000e+00 : f32
    %42 = vector.broadcast %cst_29 : f32 to vector<16x128xf32>
    %43 = arith.maximumf %41, %42 : vector<16x128xf32>
    %44 = arith.truncf %43 : vector<16x128xf32> to vector<16x128xbf16>
    %c0_30 = arith.constant 0 : index
    %c0_31 = arith.constant 0 : index
    %45 = vector.load %arg4[%c0_30, %c0_31] : memref<128x128xbf16, #tpu.memory_space<vmem>>, vector<128x128xbf16>
    %cst_32 = arith.constant dense<0.000000e+00> : vector<16x128xf32>
    %46 = tpu.matmul %44, %45, %cst_32 {dimension_numbers = #tpu.dot_dimension_numbers<[1], [0], [0], [1], [0, 0, 1, 1], [], []>} : vector<16x128xbf16>, vector<128x128xbf16>, vector<16x128xf32> -> vector<16x128xf32>
    %c5 = arith.constant 5 : index
    %c0_33 = arith.constant 0 : index
    %47 = vector.load %arg5[%c5, %c0_33] : memref<8x128xf32, #tpu.memory_space<vmem>>, vector<1x128xf32>
    %48 = vector.broadcast %47 : vector<1x128xf32> to vector<16x128xf32>
    %49 = arith.addf %46, %48 : vector<16x128xf32>
    %50 = math.tanh %49 : vector<16x128xf32>
    %c6 = arith.constant 6 : index
    %c0_34 = arith.constant 0 : index
    %51 = vector.load %arg5[%c6, %c0_34] : memref<8x128xf32, #tpu.memory_space<vmem>>, vector<1x128xf32>
    %52 = vector.broadcast %51 : vector<1x128xf32> to vector<16x128xf32>
    %53 = arith.mulf %50, %52 : vector<16x128xf32>
    %54 = arith.truncf %53 : vector<16x128xf32> to vector<16x128xbf16>
    %c0_35 = arith.constant 0 : index
    %c0_36 = arith.constant 0 : index
    %55 = vector.load %arg6[%c0_35, %c0_36] : memref<16x128xbf16, #tpu.memory_space<vmem>>, vector<16x128xbf16>
    tpu.vector_store %arg6[%c0_35, %c0_36], %54 {strides = array<i32>} : memref<16x128xbf16, #tpu.memory_space<vmem>>, vector<16x128xbf16>,
    return
  }
  func.func @transform_0(%arg0: i32) -> (i32, i32) {
    %c0_i32 = arith.constant 0 : i32
    %c0_i32_0 = arith.constant 0 : i32
    return %arg0, %c0_i32 : i32, i32
  }
  func.func @transform_1(%arg0: i32) -> (i32, i32) {
    %c0_i32 = arith.constant 0 : i32
    %c0_i32_0 = arith.constant 0 : i32
    %c0_i32_1 = arith.constant 0 : i32
    return %c0_i32, %c0_i32_0 : i32, i32
  }
  func.func @transform_2(%arg0: i32) -> (i32, i32, i32) {
    %c0_i32 = arith.constant 0 : i32
    %c0_i32_0 = arith.constant 0 : i32
    %c0_i32_1 = arith.constant 0 : i32
    %c0_i32_2 = arith.constant 0 : i32
    return %c0_i32, %c0_i32_0, %c0_i32_1 : i32, i32, i32
  }
  func.func @transform_3(%arg0: i32) -> (i32, i32) {
    %c0_i32 = arith.constant 0 : i32
    %c0_i32_0 = arith.constant 0 : i32
    %c0_i32_1 = arith.constant 0 : i32
    return %c0_i32, %c0_i32_0 : i32, i32
  }
  func.func @transform_4(%arg0: i32) -> (i32, i32) {
    %c0_i32 = arith.constant 0 : i32
    %c0_i32_0 = arith.constant 0 : i32
    %c0_i32_1 = arith.constant 0 : i32
    return %c0_i32, %c0_i32_0 : i32, i32
  }
  func.func @transform_5(%arg0: i32) -> (i32, i32) {
    %c0_i32 = arith.constant 0 : i32
    %c0_i32_0 = arith.constant 0 : i32
    return %arg0, %c0_i32 : i32, i32
  }
}

module attributes {stable_mosaic.version = 11 : i64} {
  func.func @_actor_kernel(%arg0: i32, %arg1: memref<16x16xbf16, #tpu.memory_space<vmem>>, %arg2: memref<16x128xbf16, #tpu.memory_space<vmem>>, %arg3: memref<4x128x128xbf16, #tpu.memory_space<vmem>>, %arg4: memref<128x128xbf16, #tpu.memory_space<vmem>>, %arg5: memref<8x128xf32, #tpu.memory_space<vmem>>, %arg6: memref<16x128xbf16, #tpu.memory_space<vmem>>) attributes {dimension_semantics = [#tpu.dimension_semantics<parallel>], iteration_bounds = array<i64: 4>, scalar_prefetch = 0 : i64, scratch_operands = 0 : i64, tpu.core_type = #tpu.core_type<tc>, window_params = [{transform_indices = @transform_0, window_bounds = array<i64: 16, 16>}, {pipeline_mode = #tpu.pipeline_mode<synchronous>, transform_indices = @transform_1, window_bounds = array<i64: 16, 128>}, {pipeline_mode = #tpu.pipeline_mode<synchronous>, transform_indices = @transform_2, window_bounds = array<i64: 4, 128, 128>}, {pipeline_mode = #tpu.pipeline_mode<synchronous>, transform_indices = @transform_3, window_bounds = array<i64: 128, 128>}, {pipeline_mode = #tpu.pipeline_mode<synchronous>, transform_indices = @transform_4, window_bounds = array<i64: 8, 128>}, {transform_indices = @transform_5, window_bounds = array<i64: 16, 128>}]} {
    %c0 = arith.constant 0 : index
    %c0_0 = arith.constant 0 : index
    %0 = vector.load %arg1[%c0, %c0_0] : memref<16x16xbf16, #tpu.memory_space<vmem>>, vector<16x16xbf16>
    %c0_1 = arith.constant 0 : index
    %c0_2 = arith.constant 0 : index
    %1 = vector.load %arg2[%c0_1, %c0_2] : memref<16x128xbf16, #tpu.memory_space<vmem>>, vector<16x128xbf16>
    %cst = arith.constant dense<0.000000e+00> : vector<16x128xf32>
    %2 = tpu.matmul %0, %1, %cst {dimension_numbers = #tpu.dot_dimension_numbers<[1], [0], [0], [1], [0, 0, 1, 1], [], []>} : vector<16x16xbf16>, vector<16x128xbf16>, vector<16x128xf32> -> vector<16x128xf32>
    %c0_3 = arith.constant 0 : index
    %c0_4 = arith.constant 0 : index
    %3 = vector.load %arg5[%c0_3, %c0_4] : memref<8x128xf32, #tpu.memory_space<vmem>>, vector<1x128xf32>
    %4 = vector.broadcast %3 : vector<1x128xf32> to vector<16x128xf32>
    %5 = arith.addf %2, %4 : vector<16x128xf32>
    %cst_5 = arith.constant 0.000000e+00 : f32
    %6 = vector.broadcast %cst_5 : f32 to vector<16x128xf32>
    %7 = arith.maximumf %5, %6 : vector<16x128xf32>
    %8 = arith.truncf %7 : vector<16x128xf32> to vector<16x128xbf16>
    %c0_6 = arith.constant 0 : index
    %c0_7 = arith.constant 0 : index
    %c0_8 = arith.constant 0 : index
    %9 = vector.load %arg3[%c0_6, %c0_7, %c0_8] : memref<4x128x128xbf16, #tpu.memory_space<vmem>>, vector<1x128x128xbf16>
    %10 = vector.shape_cast %9 : vector<1x128x128xbf16> to vector<128x128xbf16>
    %cst_9 = arith.constant dense<0.000000e+00> : vector<16x128xf32>
    %11 = tpu.matmul %8, %10, %cst_9 {dimension_numbers = #tpu.dot_dimension_numbers<[1], [0], [0], [1], [0, 0, 1, 1], [], []>} : vector<16x128xbf16>, vector<128x128xbf16>, vector<16x128xf32> -> vector<16x128xf32>
    %c1 = arith.constant 1 : index
    %c0_10 = arith.constant 0 : index
    %12 = vector.load %arg5[%c1, %c0_10] : memref<8x128xf32, #tpu.memory_space<vmem>>, vector<1x128xf32>
    %13 = vector.broadcast %12 : vector<1x128xf32> to vector<16x128xf32>
    %14 = arith.addf %11, %13 : vector<16x128xf32>
    %cst_11 = arith.constant 0.000000e+00 : f32
    %15 = vector.broadcast %cst_11 : f32 to vector<16x128xf32>
    %16 = arith.maximumf %14, %15 : vector<16x128xf32>
    %17 = arith.truncf %16 : vector<16x128xf32> to vector<16x128xbf16>
    %c1_12 = arith.constant 1 : index
    %c0_13 = arith.constant 0 : index
    %c0_14 = arith.constant 0 : index
    %18 = vector.load %arg3[%c1_12, %c0_13, %c0_14] : memref<4x128x128xbf16, #tpu.memory_space<vmem>>, vector<1x128x128xbf16>
    %19 = vector.shape_cast %18 : vector<1x128x128xbf16> to vector<128x128xbf16>
    %cst_15 = arith.constant dense<0.000000e+00> : vector<16x128xf32>
    %20 = tpu.matmul %17, %19, %cst_15 {dimension_numbers = #tpu.dot_dimension_numbers<[1], [0], [0], [1], [0, 0, 1, 1], [], []>} : vector<16x128xbf16>, vector<128x128xbf16>, vector<16x128xf32> -> vector<16x128xf32>
    %c2 = arith.constant 2 : index
    %c0_16 = arith.constant 0 : index
    %21 = vector.load %arg5[%c2, %c0_16] : memref<8x128xf32, #tpu.memory_space<vmem>>, vector<1x128xf32>
    %22 = vector.broadcast %21 : vector<1x128xf32> to vector<16x128xf32>
    %23 = arith.addf %20, %22 : vector<16x128xf32>
    %cst_17 = arith.constant 0.000000e+00 : f32
    %24 = vector.broadcast %cst_17 : f32 to vector<16x128xf32>
    %25 = arith.maximumf %23, %24 : vector<16x128xf32>
    %26 = arith.truncf %25 : vector<16x128xf32> to vector<16x128xbf16>
    %c2_18 = arith.constant 2 : index
    %c0_19 = arith.constant 0 : index
    %c0_20 = arith.constant 0 : index
    %27 = vector.load %arg3[%c2_18, %c0_19, %c0_20] : memref<4x128x128xbf16, #tpu.memory_space<vmem>>, vector<1x128x128xbf16>
    %28 = vector.shape_cast %27 : vector<1x128x128xbf16> to vector<128x128xbf16>
    %cst_21 = arith.constant dense<0.000000e+00> : vector<16x128xf32>
    %29 = tpu.matmul %26, %28, %cst_21 {dimension_numbers = #tpu.dot_dimension_numbers<[1], [0], [0], [1], [0, 0, 1, 1], [], []>} : vector<16x128xbf16>, vector<128x128xbf16>, vector<16x128xf32> -> vector<16x128xf32>
    %c3 = arith.constant 3 : index
    %c0_22 = arith.constant 0 : index
    %30 = vector.load %arg5[%c3, %c0_22] : memref<8x128xf32, #tpu.memory_space<vmem>>, vector<1x128xf32>
    %31 = vector.broadcast %30 : vector<1x128xf32> to vector<16x128xf32>
    %32 = arith.addf %29, %31 : vector<16x128xf32>
    %cst_23 = arith.constant 0.000000e+00 : f32
    %33 = vector.broadcast %cst_23 : f32 to vector<16x128xf32>
    %34 = arith.maximumf %32, %33 : vector<16x128xf32>
    %35 = arith.truncf %34 : vector<16x128xf32> to vector<16x128xbf16>
    %c3_24 = arith.constant 3 : index
    %c0_25 = arith.constant 0 : index
    %c0_26 = arith.constant 0 : index
    %36 = vector.load %arg3[%c3_24, %c0_25, %c0_26] : memref<4x128x128xbf16, #tpu.memory_space<vmem>>, vector<1x128x128xbf16>
    %37 = vector.shape_cast %36 : vector<1x128x128xbf16> to vector<128x128xbf16>
    %cst_27 = arith.constant dense<0.000000e+00> : vector<16x128xf32>
    %38 = tpu.matmul %35, %37, %cst_27 {dimension_numbers = #tpu.dot_dimension_numbers<[1], [0], [0], [1], [0, 0, 1, 1], [], []>} : vector<16x128xbf16>, vector<128x128xbf16>, vector<16x128xf32> -> vector<16x128xf32>
    %c4 = arith.constant 4 : index
    %c0_28 = arith.constant 0 : index
    %39 = vector.load %arg5[%c4, %c0_28] : memref<8x128xf32, #tpu.memory_space<vmem>>, vector<1x128xf32>
    %40 = vector.broadcast %39 : vector<1x128xf32> to vector<16x128xf32>
    %41 = arith.addf %38, %40 : vector<16x128xf32>
    %cst_29 = arith.constant 0.000000e+00 : f32
    %42 = vector.broadcast %cst_29 : f32 to vector<16x128xf32>
    %43 = arith.maximumf %41, %42 : vector<16x128xf32>
    %44 = arith.truncf %43 : vector<16x128xf32> to vector<16x128xbf16>
    %c0_30 = arith.constant 0 : index
    %c0_31 = arith.constant 0 : index
    %45 = vector.load %arg4[%c0_30, %c0_31] : memref<128x128xbf16, #tpu.memory_space<vmem>>, vector<128x128xbf16>
    %cst_32 = arith.constant dense<0.000000e+00> : vector<16x128xf32>
    %46 = tpu.matmul %44, %45, %cst_32 {dimension_numbers = #tpu.dot_dimension_numbers<[1], [0], [0], [1], [0, 0, 1, 1], [], []>} : vector<16x128xbf16>, vector<128x128xbf16>, vector<16x128xf32> -> vector<16x128xf32>
    %c5 = arith.constant 5 : index
    %c0_33 = arith.constant 0 : index
    %47 = vector.load %arg5[%c5, %c0_33] : memref<8x128xf32, #tpu.memory_space<vmem>>, vector<1x128xf32>
    %48 = vector.broadcast %47 : vector<1x128xf32> to vector<16x128xf32>
    %49 = arith.addf %46, %48 : vector<16x128xf32>
    %50 = math.tanh %49 : vector<16x128xf32>
    %c6 = arith.constant 6 : index
    %c0_34 = arith.constant 0 : index
    %51 = vector.load %arg5[%c6, %c0_34] : memref<8x128xf32, #tpu.memory_space<vmem>>, vector<1x128xf32>
    %52 = vector.broadcast %51 : vector<1x128xf32> to vector<16x128xf32>
    %53 = arith.mulf %50, %52 : vector<16x128xf32>
    %54 = arith.truncf %53 : vector<16x128xf32> to vector<16x128xbf16>
    %c0_35 = arith.constant 0 : index
    %c0_36 = arith.constant 0 : index
    %55 = vector.load %arg6[%c0_35, %c0_36] : memref<16x128xbf16, #tpu.memory_space<vmem>>, vector<16x128xbf16>
    tpu.vector_store %arg6[%c0_35, %c0_36], %54 {strides = array<i32>} : memref<16x128xbf16, #tpu.memory_space<vmem>>, vector<16x128xbf16>,
    return
  }
  func.func @transform_0(%arg0: i32) -> (i32, i32) {
    %c0_i32 = arith.constant 0 : i32
    %c0_i32_0 = arith.constant 0 : i32
    return %arg0, %c0_i32 : i32, i32
  }
  func.func @transform_1(%arg0: i32) -> (i32, i32) {
    %c0_i32 = arith.constant 0 : i32
    %c0_i32_0 = arith.constant 0 : i32
    %c0_i32_1 = arith.constant 0 : i32
    return %c0_i32, %c0_i32_0 : i32, i32
  }
  func.func @transform_2(%arg0: i32) -> (i32, i32, i32) {
    %c0_i32 = arith.constant 0 : i32
    %c0_i32_0 = arith.constant 0 : i32
    %c0_i32_1 = arith.constant 0 : i32
    %c0_i32_2 = arith.constant 0 : i32
    return %c0_i32, %c0_i32_0, %c0_i32_1 : i32, i32, i32
  }
  func.func @transform_3(%arg0: i32) -> (i32, i32) {
    %c0_i32 = arith.constant 0 : i32
    %c0_i32_0 = arith.constant 0 : i32
    %c0_i32_1 = arith.constant 0 : i32
    return %c0_i32, %c0_i32_0 : i32, i32
  }
  func.func @transform_4(%arg0: i32) -> (i32, i32) {
    %c0_i32 = arith.constant 0 : i32
    %c0_i32_0 = arith.constant 0 : i32
    %c0_i32_1 = arith.constant 0 : i32
    return %c0_i32, %c0_i32_0 : i32, i32
  }
  func.func @transform_5(%arg0: i32) -> (i32, i32) {
    %c0_i32 = arith.constant 0 : i32
    %c0_i32_0 = arith.constant 0 : i32
    return %arg0, %c0_i32 : i32, i32
  }
}

</mosaic_0001>

<bundles_post_ra>
// kernel: tpu_custom_call.1
= control target key start
LH: loop header
LB: loop body
LE: loop exit
PB: predicated region body
PF: predicated region fallthrough
CT: control target
= control target key end

     0   :  { %10 = vsyncpa [#allocation3], 0  ;;  %s1728_s0 = inlined_call_operand.vmem [shape: bf16[64,16], index: 0, kind: input, shape index: {}]   ;;  %s1729_s1 = inlined_call_operand.vmem [shape: bf16[16,128], index: 1, kind: input, shape index: {}]   ;;  %s1730_s2 = inlined_call_operand.hbm [shape: bf16[4,128,128], index: 2, kind: input, shape index: {}]   ;;  %s1731_s3 = inlined_call_operand.hbm [shape: bf16[128,128], index: 3, kind: input, shape index: {}]   ;;  %s1732_s4 = inlined_call_operand.vmem [shape: f32[8,128], index: 4, kind: input, shape index: {}]   ;;  %s1733_s5 = inlined_call_operand.hbm [shape: bf16[64,128], index: 5, kind: output, shape index: {}]  }
   0x1   :  { %11 = vsyncpa [#allocation6], 0 }
   0x2   :  { %12 = vsyncpa [#allocation4], 0 }
   0x3   :  { %14 = vsyncpa [#allocation4 + $0x1], 0  ;;  %s1509_s18 = smov 0   ;;  %s1511_s19 = smov 0  }
   0x4   :  { %s1513_s20 = smov 0   ;;  %s1515_s21 = smov 0  }
   0x5 LB: > { %s1530_s22 = sadd.s32 4294967295, %s1468_s21   ;;  %s1007_s23 = sadd.s32 4294967294, %s1468_s21   ;;  %s1468_s21 = sphi %s1515_s21, %s1747_s21   ;;  %s1464_s20 = sphi %s1513_s20, %s1746_s20   ;;  %s1460_s19 = sphi %s1511_s19, %s1745_s19   ;;  %s1456_s18 = sphi %s1509_s18, %s1744_s18  }
   0x6   : > { %s1534_s24 = sadd.s32 1, %s1468_s21   ;;  %s137_s25 = sadd.s32 1, %s1464_s20 }
   0x7   : > { %s134_s26 = ssub.s32 %s1468_s21, %s1534_s24  ;;  %p147_p0 = scmp.ne.s32.totalorder %s1464_s20, %s1460_s19 }
   0x8   : > { %p135_p1 = scmp.eq.s32.totalorder %s134_s26, 0  ;;  %p148_p2 = scmp.eq.s32.totalorder %s1530_s22, 3 }
   0x9   : > { %p153_p3 = scmp.ne.s32.totalorder %s1460_s19, %s1456_s18  ;;  %p154_p4 = scmp.eq.s32.totalorder %s1007_s23, 3 }
   0xa   : > { %s1545_s27 = scalar_select %p135_p1, %s1464_s20, %s137_s25  }
   0xb   : > { %p1547_p5 = por %p148_p2, %p147_p0  ;;  %p1551_p6 = por %p154_p4, %p153_p3 }
   0xc   : > { %p1008_p7 = scmp.ge.s32.totalorder %s1468_s21, 1  ;;  %p161_p8 = scmp.lt.s32.totalorder %s1468_s21, 5 }
   0xd   : > { %s1736_s29 = scalar_select %p1551_p6, 1, 0 }
   0xe   : > { %p1734_p9 = scmp.eq.s32.totalorder %s1530_s22, 0  ;;  %p1558_p10 = pnand %p1008_p7, %p161_p8 }
   0xf   : > { %s1470_s6 = smov [#allocation2]   ;;  %s1471_s9 = smov [#allocation5]  }
  0x10   : > { %s176_s7 = sshll.u32 %s1470_s6, 4  ;;  %p1246_p11 = pneg %p1558_p10  ;;  %s177_s7 = int_to_ptr.vmem [resolvable:$true] %s176_s7 }
  0x11   : > { %s189_s10 = sshll.u32 %s1471_s9, 4  ;;  %s1359_s11 = scalar_lea.vmem %s177_s7, 4096  ;;  %s190_s10 = int_to_ptr.vmem [resolvable:$true] %s189_s10 }
  0x12   : > { %p1566_p12 = pnand %p1734_p9, %p1246_p11  ;;  %p1360_p0 = scmp.ne.s32.totalorder %s177_s7, %s1359_s11 }
  0x13   : > { %p1367_p3 = scmp.lt.s32.totalorder %s177_s7, %s177_s7  ;;  %p1368_p4 = scmp.lt.s32.totalorder %s1359_s11, %s1359_s11 }
  0x14   : > { %p1350_p13 = pneg %p1566_p12 }
  0x15   : > { %p1369_p7 = por %p1368_p4, %p1367_p3 }
  0x16   : > { %p1362_p1 = pnand %p1360_p0, %p1350_p13 }
  0x18   : > { %p1363_p2 = pneg %p1362_p1 }
  0x1a   : > { %p1370_p8 = pnand %p1369_p7, %p1363_p2 }
  0x1c   : > { %1373 = shalt.err (!%p1370_p8)
}
  0x1d   : > { %s1472_s12 = smov 64   ;;  %s1473_s13 = smov 4  }
  0x1e   : > { %1249 = dma.hbm_to_vmem [thread:$0]  (!%p1566_p12), %s1730_s2, 4096, %s177_s7, [#allocation3], %s1472_s12, %s1472_s12, %s1473_s13  }
  0x1f   : > { %s1385_s16 = scalar_lea.vmem %s190_s10, 1024  ;;  %p1393_p9 = scmp.lt.s32.totalorder %s190_s10, %s190_s10 }
  0x20   : > { %p1386_p11 = scmp.ne.s32.totalorder %s190_s10, %s1385_s16  ;;  %p1394_p6 = scmp.lt.s32.totalorder %s1385_s16, %s1385_s16 }
  0x22   : > { %p1388_p0 = pnand %p1386_p11, %p1350_p13  ;;  %p1395_p3 = por %p1394_p6, %p1393_p9 }
  0x24   : > { %p1389_p1 = pneg %p1388_p0 }
  0x26   : > { %p1396_p2 = pnand %p1395_p3, %p1389_p1 }
  0x28   : > { %1399 = shalt.err (!%p1396_p2)
}
  0x29   : > { %1252 = dma.hbm_to_vmem [thread:$0]  (!%p1566_p12), %s1731_s3, 1024, %s190_s10, [#allocation6], %s1472_s12, %s1472_s12, %s1473_s13  }
  0x2a   : > { %217 = sbr.rel (%p1558_p10) target bundleno = 1304 (0x518), region = 40  ;;  %p1739_p4 = scmp.eq.s32.totalorder (!%p1558_p10), %s1530_s22, 0 }
  0x2f   : > { %1443 = dma.done.wait (%p1739_p4), [#allocation3], 4096   ;;  %p1740_p13 = pmov %p1739_p4 }
  0x30   : > { %p1741_p7 = pmov %p1739_p4 }
  0x31   : > { %1445 = vsyncadd (%p1740_p13), [#allocation3], 4294963200 }
  0x32   : > { %1447 = dma.done.wait (%p1741_p7), [#allocation6], 1024   ;;  %p1742_p6 = pmov %p1739_p4 }
  0x33   : > { %s1016_s25 = sshll.u32 %s1530_s22, 1  ;;  %v1474_v0 = vmov 0.0   ;;  %vm1475_vm0 = vmmov 0   ;;  %v1302_v1 = vld [vmem:[%s1729_s1] sm:$0xff]   ;;  %vm277_vm1 = vcmask 130048   ;;  %v1304_v3 = vld [vmem:[#allocation2 + $0x38] sm:$0xff]  }
  0x34   : > { %1449 = vsyncadd (%p1742_p6), [#allocation6], 4294966272  ;;  %1130 = vmatprep.subr.bf16.mxu0 %v1474_v0  ;;  %1132 = vmatprep.mubr.msk.bf16.mxu0 %vm1475_vm0, %v1474_v0  ;;  %p250_p9 = scmp.lt.s32.totalorder %s1016_s25, 7  ;;  %v1305_v4 = vld [vmem:[#allocation2 + $0x30] sm:$0xff]   ;;  %v1306_v5 = vld [vmem:[#allocation2 + $0x28] sm:$0xff]   ;;  %s246_s6 = sand.u32 1, %s1460_s19  }
  0x35   : > { %1136 = vmatprep.subr.bf16.mxu1 %v1474_v0  ;;  %1152 = vmatprep.mubr.msk.bf16.mxu1 %vm1475_vm0, %v1474_v0  ;;  %v1307_v6 = vld [vmem:[#allocation2 + $0x20] sm:$0xff]   ;;  %v1308_v7 = vld [vmem:[#allocation2 + $0x18] sm:$0xff]   ;;  %v1309_v8 = vld [vmem:[#allocation2 + $0x10] sm:$0xff]   ;;  %s1077_s10 = sshll.u32 %s1530_s22, 7  ;;  %s1688_s16 = scalar_lea.sflag [#allocation4], %s246_s6 }
  0x36   : > { %s1749_s25 = smov (!%p250_p9, %s1016_s25), 7  ;;  %1131 = vmatpush3.bf16.msra.mxu0 %v1302_v1  ;;  %1137 = vmatpush3.bf16.msra.mxu1 %v1304_v3  ;;  %v1310_v9 = vld [vmem:[#allocation2 + $0x8] sm:$0xff]   ;;  %v1311_v10 = vld [vmem:[#allocation2] sm:$0xff]   ;;  %v1312_v11 = vld [vmem:[#allocation2 + $0x78] sm:$0xff]   ;;  %s1684_s15 = scalar_lea.hbm %s1733_s5, %s1077_s10 }
  0x37   : > { %s1017_s26 = sshll.u32 %s1749_s25, 2  ;;  %1156 = vmatprep.subr.bf16.mxu0 %v1474_v0  ;;  %1138 = vmatprep.subr.bf16.mxu1 %v1474_v0  ;;  %v1313_v12 = vld [vmem:[#allocation2 + $0x70] sm:$0xff]   ;;  %v1314_v13 = vld [vmem:[#allocation2 + $0x68] sm:$0xff]   ;;  %v1315_v14 = vld [vmem:[#allocation2 + $0x60] sm:$0xff]   ;;  %s1476_s17 = smov [#allocation7]  }
  0x38   : > { %s253_s7 = scalar_lea.vmem %s1728_s0, %s1017_s26  ;;  %v1316_v15 = vld [vmem:[#allocation2 + $0x58] sm:$0xff]   ;;  %v1018_v16 = vld [vmem:[%s1732_s4] ss:$0 sm:$0xff]  ;;  %v1317_v26 = vld [vmem:[#allocation2 + $0x50] sm:$0xff]   ;;  %s1404_s23 = sshll.u32 %s1476_s17, 4  ;;  %s1405_s23 = int_to_ptr.vmem [resolvable:$false] %s1404_s23 }
  0x39   : > { %v1303_v2 = vld [vmem:[%s253_s7] sm:$0xff]   ;;  %v1318_v27 = vld [vmem:[#allocation2 + $0x48] sm:$0xff]   ;;  %v1320_v29 = vld [vmem:[#allocation2 + $0xb8] sm:$0xff]   ;;  %s1015_s7 = sshll.u32 %s246_s6, 3  ;;  %s1406_s25 = scalar_lea.vmem %s1405_s23, 256 }
  0x3a   : > { %1133 = vmatmul.mubr.msk.bf16.vlgmr.msra.gmra.mxu0 %vm277_vm1, %v1303_v2  ;;  %1139 = vmatpush3.bf16.msra.mxu1 %v1305_v4  ;;  %v1319_v28 = vld [vmem:[#allocation2 + $0x40] sm:$0xff]   ;;  %v1321_v30 = vld [vmem:[#allocation2 + $0xb0] sm:$0xff]   ;;  %v1322_v31 = vld [vmem:[#allocation2 + $0xa8] sm:$0xff]   ;;  %s248_s11 = scalar_lea.vmem [#allocation7], %s1015_s7 }
  0x3b   : > { %1172 = vmatprep.mubr.msk.bf16.mxu0 %vm1475_vm0, %v1474_v0  ;;  %1140 = vmatprep.subr.bf16.mxu1 %v1474_v0  ;;  %v1323_v32 = vld [vmem:[#allocation2 + $0xa0] sm:$0xff]   ;;  %v1324_v33 = vld [vmem:[#allocation2 + $0x98] sm:$0xff]   ;;  %v1325_v44 = vld [vmem:[#allocation2 + $0x90] sm:$0xff]   ;;  %s923_s12 = sshll.u32 %s248_s11, 4  ;;  %s1686_s12 = int_to_ptr.vmem [resolvable:$true] %s923_s12 }
  0x3c   : > { %1157 = vmatpush3.bf16.msra.mxu0 %v1312_v11  ;;  %v1022_v34 = vld [vmem:[%s1732_s4 + $0x1] ss:$0 sm:$0xff]  ;;  %v1326_v45 = vld [vmem:[#allocation2 + $0x88] sm:$0xff]   ;;  %v1328_v47 = vld [vmem:[#allocation2 + $0xf8] sm:$0xff]   ;;  %s1400_s22 = scalar_lea.vmem %s1686_s12, 128  ;;  %p1407_p11 = scmp.lt.s32.totalorder %s1686_s12, %s1405_s23 }
  0x3d   : > { %1158 = vmatprep.subr.bf16.mxu0 %v1474_v0  ;;  %v1327_v46 = vld [vmem:[#allocation2 + $0x80] sm:$0xff]   ;;  %v1329_v48 = vld [vmem:[#allocation2 + $0xf0] sm:$0xff]   ;;  %v1330_v49 = vld [vmem:[#allocation2 + $0xe8] sm:$0xff]   ;;  %p1401_p10 = scmp.ne.s32.totalorder %s1686_s12, %s1400_s22  ;;  %p1408_p0 = scmp.lt.s32.totalorder %s1406_s25, %s1400_s22 }
  0x3e   : > { %1141 = vmatpush3.bf16.msra.mxu1 %v1306_v5  ;;  %v1331_v50 = vld [vmem:[#allocation2 + $0xe0] sm:$0xff]   ;;  %v1332_v51 = vld [vmem:[#allocation2 + $0xd8] sm:$0xff]   ;;  %v1333_v62 = vld [vmem:[#allocation2 + $0xd0] sm:$0xff]  }
  0x3f   : > { %1142 = vmatprep.subr.bf16.mxu1 %v1474_v0  ;;  %v1031_v52 = vld [vmem:[%s1732_s4 + $0x2] ss:$0 sm:$0xff]  ;;  %v1334_v63 = vld [vmem:[#allocation2 + $0xc8] sm:$0xff]   ;;  %v1336_v2 = vld [vmem:[#allocation5 + $0x38] sm:$0xff]   ;;  %p1402_p12 = pnand %p1401_p10, %p1547_p5  ;;  %p1409_p1 = por %p1408_p0, %p1407_p11 }
  0x40   : > { %1159 = vmatpush3.bf16.msra.mxu0 %v1313_v12  ;;  %v1335_v1 = vld [vmem:[#allocation2 + $0xc0] sm:$0xff]   ;;  %v1337_v3 = vld [vmem:[#allocation5 + $0x30] sm:$0xff]   ;;  %v1338_v4 = vld [vmem:[#allocation5 + $0x28] sm:$0xff]  }
  0x41   : > { %1160 = vmatprep.subr.bf16.mxu0 %v1474_v0  ;;  %v1339_v5 = vld [vmem:[#allocation5 + $0x20] sm:$0xff]   ;;  %p1403_p8 = pneg %p1402_p12 }
  0x42   : > { %1143 = vmatpush3.bf16.msra.mxu1 %v1307_v6  ;;  %v1340_v6 = vld [vmem:[#allocation5 + $0x18] sm:$0xff]  }
  0x43   : > { %1144 = vmatprep.subr.bf16.mxu1 %v1474_v0  ;;  %p1410_p3 = pnand %p1409_p1, %p1403_p8 }
  0x44   : > { %1161 = vmatpush3.bf16.msra.mxu0 %v1314_v13 }
  0x45   : > { %1162 = vmatprep.subr.bf16.mxu0 %v1474_v0 }
  0x46   : > { %1145 = vmatpush3.bf16.msra.mxu1 %v1308_v7  ;;  %v1040_v7 = vld [vmem:[%s1732_s4 + $0x3] ss:$0 sm:$0xff] }
  0x47   : > { %1146 = vmatprep.subr.bf16.mxu1 %v1474_v0 }
  0x48   : > { %1163 = vmatpush3.bf16.msra.mxu0 %v1315_v14 }
  0x49   : > { %1164 = vmatprep.subr.bf16.mxu0 %v1474_v0 }
  0x4a   : > { %1147 = vmatpush3.bf16.msra.mxu1 %v1309_v8 }
  0x4b   : > { %1148 = vmatprep.subr.bf16.mxu1 %v1474_v0 }
  0x4c   : > { %1165 = vmatpush3.bf16.msra.mxu0 %v1316_v15 }
  0x4d   : > { %1166 = vmatprep.subr.bf16.mxu0 %v1474_v0 }
  0x4e   : > { %1149 = vmatpush3.bf16.msra.mxu1 %v1310_v9 }
  0x4f   : > { %1150 = vmatprep.subr.bf16.mxu1 %v1474_v0 }
  0x50   : > { %1167 = vmatpush3.bf16.msra.mxu0 %v1317_v26 }
  0x51   : > { %1168 = vmatprep.subr.bf16.mxu0 %v1474_v0 }
  0x52   : > { %1151 = vmatpush3.bf16.msra.mxu1 %v1311_v10 }
  0x53   : > { %1176 = vmatprep.subr.bf16.mxu1 %v1474_v0 }
  0x54   : > { %1169 = vmatpush3.bf16.msra.mxu0 %v1318_v27 }
  0x55   : > { %1170 = vmatprep.subr.bf16.mxu0 %v1474_v0 }
  0x58   : > { %1171 = vmatpush3.bf16.msra.mxu0 %v1319_v28 }
  0x59   : > { %1196 = vmatprep.subr.bf16.mxu0 %v1474_v0 }
  0xfa   : > { %v315_v17 = vpop.f32.mrf.mxu0 }
  0xfb   : > { %v316_v19 = vadd.f32 %v1018_v16, %v315_v17  ;;  %v1341_v17 = vld [vmem:[#allocation5 + $0x10] sm:$0xff]  }
  0xfc   : > { %v1134_v18 = vpop.f32.mrf.mxu0 }
  0xfd   : > { %v322_v23 = vmax.f32 %v316_v19, 0.0  ;;  %v1342_v18 = vld [vmem:[#allocation5 + $0x8] sm:$0xff]   ;;  %v1343_v19 = vld [vmem:[#allocation5] sm:$0xff]  }
  0xfe   : > { %v318_v20 = vpop.f32.mrf.mxu0 }
  0xff   : > { %v319_v21 = vadd.f32 %v1018_v16, %v318_v20  ;;  %v1049_v20 = vld [vmem:[%s1732_s4 + $0x4] ss:$0 sm:$0xff] }
 0x100   : > { %v1135_v22 = vpop.f32.mrf.mxu0 }
 0x101   : > { %v323_v24 = vmax.f32 %v319_v21, 0.0 }
 0x103   : > { %v324_v25 = vpack.c.bf16 %v323_v24, %v322_v23 }
 0x105   : > { %1153 = vmatmul.mubr.bf16.vlgmr.msra.gmra.mxu1 %v324_v25 }
 0x106   : > { %1192 = vmatprep.mubr.msk.bf16.mxu1 %vm1475_vm0, %v1474_v0  ;;  %1177 = vmatpush3.bf16.msra.mxu1 %v1320_v29 }
 0x107   : > { %1178 = vmatprep.subr.bf16.mxu1 %v1474_v0 }
 0x10a   : > { %1179 = vmatpush3.bf16.msra.mxu1 %v1321_v30 }
 0x10b   : > { %1180 = vmatprep.subr.bf16.mxu1 %v1474_v0 }
 0x10e   : > { %1181 = vmatpush3.bf16.msra.mxu1 %v1322_v31 }
 0x10f   : > { %1182 = vmatprep.subr.bf16.mxu1 %v1474_v0 }
 0x112   : > { %1183 = vmatpush3.bf16.msra.mxu1 %v1323_v32 }
 0x113   : > { %1184 = vmatprep.subr.bf16.mxu1 %v1474_v0 }
 0x116   : > { %1185 = vmatpush3.bf16.msra.mxu1 %v1324_v33 }
 0x117   : > { %1186 = vmatprep.subr.bf16.mxu1 %v1474_v0 }
 0x11a   : > { %1187 = vmatpush3.bf16.msra.mxu1 %v1325_v44 }
 0x11b   : > { %1188 = vmatprep.subr.bf16.mxu1 %v1474_v0 }
 0x11e   : > { %1189 = vmatpush3.bf16.msra.mxu1 %v1326_v45 }
 0x11f   : > { %1190 = vmatprep.subr.bf16.mxu1 %v1474_v0 }
 0x122   : > { %1191 = vmatpush3.bf16.msra.mxu1 %v1327_v46 }
 0x123   : > { %1216 = vmatprep.subr.bf16.mxu1 %v1474_v0 }
 0x1c5   : > { %v428_v35 = vpop.f32.mrf.mxu1 }
 0x1c6   : > { %v429_v37 = vadd.f32 %v1022_v34, %v428_v35 }
 0x1c7   : > { %v1154_v36 = vpop.f32.mrf.mxu1 }
 0x1c8   : > { %v435_v41 = vmax.f32 %v429_v37, 0.0  ;;  %v1067_v37 = vld [vmem:[%s1732_s4 + $0x6] ss:$0 sm:$0xff] }
 0x1c9   : > { %v431_v38 = vpop.f32.mrf.mxu1 }
 0x1ca   : > { %v432_v39 = vadd.f32 %v1022_v34, %v431_v38 }
 0x1cb   : > { %v1155_v40 = vpop.f32.mrf.mxu1 }
 0x1cc   : > { %v436_v42 = vmax.f32 %v432_v39, 0.0 }
 0x1ce   : > { %v437_v43 = vpack.c.bf16 %v436_v42, %v435_v41 }
 0x1d0   : > { %1173 = vmatmul.mubr.bf16.vlgmr.msra.gmra.mxu0 %v437_v43 }
 0x1d1   : > { %1212 = vmatprep.mubr.msk.bf16.mxu0 %vm1475_vm0, %v1474_v0  ;;  %1197 = vmatpush3.bf16.msra.mxu0 %v1328_v47 }
 0x1d2   : > { %1198 = vmatprep.subr.bf16.mxu0 %v1474_v0 }
 0x1d5   : > { %1199 = vmatpush3.bf16.msra.mxu0 %v1329_v48 }
 0x1d6   : > { %1200 = vmatprep.subr.bf16.mxu0 %v1474_v0 }
 0x1d9   : > { %1201 = vmatpush3.bf16.msra.mxu0 %v1330_v49 }
 0x1da   : > { %1202 = vmatprep.subr.bf16.mxu0 %v1474_v0 }
 0x1dd   : > { %1203 = vmatpush3.bf16.msra.mxu0 %v1331_v50 }
 0x1de   : > { %1204 = vmatprep.subr.bf16.mxu0 %v1474_v0 }
 0x1e1   : > { %1205 = vmatpush3.bf16.msra.mxu0 %v1332_v51 }
 0x1e2   : > { %1206 = vmatprep.subr.bf16.mxu0 %v1474_v0 }
 0x1e5   : > { %1207 = vmatpush3.bf16.msra.mxu0 %v1333_v62 }
 0x1e6   : > { %1208 = vmatprep.subr.bf16.mxu0 %v1474_v0 }
 0x1e9   : > { %1209 = vmatpush3.bf16.msra.mxu0 %v1334_v63 }
 0x1ea   : > { %1210 = vmatprep.subr.bf16.mxu0 %v1474_v0 }
 0x1ed   : > { %1211 = vmatpush3.bf16.msra.mxu0 %v1335_v1 }
 0x290   : > { %v542_v53 = vpop.f32.mrf.mxu0 }
 0x291   : > { %v543_v55 = vadd.f32 %v1031_v52, %v542_v53 }
 0x292   : > { %v1174_v54 = vpop.f32.mrf.mxu0 }
 0x293   : > { %v549_v59 = vmax.f32 %v543_v55, 0.0 }
 0x294   : > { %v545_v56 = vpop.f32.mrf.mxu0 }
 0x295   : > { %v546_v57 = vadd.f32 %v1031_v52, %v545_v56 }
 0x296   : > { %v1175_v58 = vpop.f32.mrf.mxu0 }
 0x297   : > { %v550_v60 = vmax.f32 %v546_v57, 0.0 }
 0x299   : > { %v551_v61 = vpack.c.bf16 %v550_v60, %v549_v59 }
 0x29b   : > { %1193 = vmatmul.mubr.bf16.vlgmr.msra.gmra.mxu1 %v551_v61 }
 0x29c   : > { %1232 = vmatprep.mubr.msk.bf16.mxu1 %vm1475_vm0, %v1474_v0  ;;  %1217 = vmatpush3.bf16.msra.mxu1 %v1336_v2 }
 0x29d   : > { %1218 = vmatprep.subr.bf16.mxu1 %v1474_v0 }
 0x2a0   : > { %1219 = vmatpush3.bf16.msra.mxu1 %v1337_v3 }
 0x2a1   : > { %1220 = vmatprep.subr.bf16.mxu1 %v1474_v0 }
 0x2a4   : > { %1221 = vmatpush3.bf16.msra.mxu1 %v1338_v4 }
 0x2a5   : > { %1222 = vmatprep.subr.bf16.mxu1 %v1474_v0 }
 0x2a8   : > { %1223 = vmatpush3.bf16.msra.mxu1 %v1339_v5 }
 0x2a9   : > { %1224 = vmatprep.subr.bf16.mxu1 %v1474_v0 }
 0x2ac   : > { %1225 = vmatpush3.bf16.msra.mxu1 %v1340_v6 }
 0x2ad   : > { %1226 = vmatprep.subr.bf16.mxu1 %v1474_v0 }
 0x2b0   : > { %1227 = vmatpush3.bf16.msra.mxu1 %v1341_v17 }
 0x2b1   : > { %1228 = vmatprep.subr.bf16.mxu1 %v1474_v0 }
 0x2b4   : > { %1229 = vmatpush3.bf16.msra.mxu1 %v1342_v18 }
 0x2b5   : > { %1230 = vmatprep.subr.bf16.mxu1 %v1474_v0  ;;  %v1058_v0 = vld [vmem:[%s1732_s4 + $0x5] ss:$0 sm:$0xff] }
 0x2b8   : > { %1231 = vmatpush3.bf16.msra.mxu1 %v1343_v19 }
 0x35b   : > { %v656_v8 = vpop.f32.mrf.mxu1 }
 0x35c   : > { %v657_v10 = vadd.f32 %v1040_v7, %v656_v8 }
 0x35d   : > { %v1194_v9 = vpop.f32.mrf.mxu1 }
 0x35e   : > { %v663_v14 = vmax.f32 %v657_v10, 0.0 }
 0x35f   : > { %v659_v11 = vpop.f32.mrf.mxu1 }
 0x360   : > { %v660_v12 = vadd.f32 %v1040_v7, %v659_v11 }
 0x361   : > { %v1195_v13 = vpop.f32.mrf.mxu1 }
 0x362   : > { %v664_v15 = vmax.f32 %v660_v12, 0.0 }
 0x364   : > { %v665_v16 = vpack.c.bf16 %v664_v15, %v663_v14 }
 0x366   : > { %1213 = vmatmul.mubr.bf16.vlgmr.msra.gmra.mxu0 %v665_v16 }
 0x426   : > { %v770_v21 = vpop.f32.mrf.mxu0 }
 0x427   : > { %v771_v23 = vadd.f32 %v1049_v20, %v770_v21 }
 0x428   : > { %v1214_v22 = vpop.f32.mrf.mxu0 }
 0x429   : > { %v777_v27 = vmax.f32 %v771_v23, 0.0 }
 0x42a   : > { %v773_v24 = vpop.f32.mrf.mxu0 }
 0x42b   : > { %v774_v25 = vadd.f32 %v1049_v20, %v773_v24 }
 0x42c   : > { %v1215_v26 = vpop.f32.mrf.mxu0 }
 0x42d   : > { %v778_v28 = vmax.f32 %v774_v25, 0.0 }
 0x42f   : > { %v779_v29 = vpack.c.bf16 %v778_v28, %v777_v27 }
 0x431   : > { %1233 = vmatmul.mubr.bf16.vlgmr.msra.gmra.mxu1 %v779_v29 }
 0x4f1   : > { %v883_v30 = vpop.f32.mrf.mxu1 }
 0x4f2   : > { %v884_v31 = vadd.f32 %v1058_v0, %v883_v30 }
 0x4f3   : > { %v1234_v32 = vpop.f32.mrf.mxu1 }
 0x4f4   : > { %1344 = vtanh.f32 %v884_v31 }
 0x4f5   : > { %v886_v33 = vpop.f32.mrf.mxu1 }
 0x4f6   : > { %v887_v34 = vadd.f32 %v1058_v0, %v886_v33 }
 0x4f7   : > { %v1235_v35 = vpop.f32.mrf.mxu1 }
 0x4f8   : > { %1346 = vtanh.f32 %v887_v34 }
 0x501   : > { %v1345_v36 = vpop.eup %1344 }
 0x502   : > { %v897_v39 = vmul.f32 %v1345_v36, %v1067_v37 }
 0x505   : > { %v1347_v38 = vpop.eup %1346 }
 0x506   : > { %v898_v40 = vmul.f32 %v1347_v38, %v1067_v37 }
 0x508   : > { %v1081_v41 = vpack.c.bf16 %v898_v40, %v897_v39 }
 0x50a   : > { %1082 = vst [vmem:[%s248_s11] sm:$0xff] %v1081_v41  }
 0x50b   : > { %1413 = shalt.err (!%p1410_p3)
}
 0x50c   : > { %s1414_s26 = scalar_lea.hbm %s1684_s15, 128  ;;  %s1418_s7 = scalar_lea.hbm %s1733_s5, 512 }
 0x50d   : > { %p1415_p2 = scmp.ne.s32.totalorder %s1684_s15, %s1414_s26  ;;  %p1419_p7 = scmp.lt.s32.totalorder %s1684_s15, %s1733_s5 }
 0x50e   : > { %p1420_p6 = scmp.lt.s32.totalorder %s1418_s7, %s1414_s26 }
 0x50f   : > { %p1416_p4 = pnand %p1415_p2, %p1547_p5 }
 0x510   : > { %p1421_p9 = por %p1420_p6, %p1419_p7 }
 0x511   : > { %p1417_p13 = pneg %p1416_p4 }
 0x513   : > { %p1422_p10 = pnand %p1421_p9, %p1417_p13 }
 0x515   : > { %1425 = shalt.err (!%p1422_p10)
}
 0x516   : > { %s1477_s10 = smov 64   ;;  %s1478_s11 = smov 4  }
 0x517   : > { %1244 = dma.vmem_to_hbm [thread:$0]  (%p1547_p5), %s1686_s12, 128, %s1684_s15, %s1688_s16, %s1477_s10, %s1477_s10, %s1478_s11  }
 0x518 PF: > { %p1261_p12 = scmp.ge.s32.totalorder %s1468_s21, 2  ;;  %s938_s13 = sand.u32 1, %s1456_s18  }
 0x519   : > { %p1743_p8 = scmp.ne.s32.totalorder %s1736_s29, 0  ;;  %s939_s14 = scalar_lea.sflag [#allocation4], %s938_s13 }
 0x51b   : > { %p1254_p11 = pnand %p1261_p12, %p1743_p8 }
 0x51d   : > { %p1255_p0 = pneg %p1254_p11 }
 0x51f   : > { %1451 = dma.done.wait (%p1255_p0), %s939_s14, 128  }
 0x520   : > { %1453 = vsyncadd (%p1255_p0), %s939_s14, 4294967168  ;;  %p17_p1 = scmp.ge.s32.totalorder %s1534_s24, 6   ;;  %s1744_s18 = smov %s1460_s19 }
 0x521   : > { %s1745_s19 = smov %s1464_s20  ;;  %s1746_s20 = smov %s1545_s27 }
 0x522   : > { %s1747_s21 = smov %s1534_s24  ;;  %19 = sbr.rel (!%p17_p1) target bundleno = 5 (0x5), region = 87 }
 0x527   :  { %944 = vsyncpa [#allocation3], 1 }
 0x528   :  { %946 = vsyncpa [#allocation3 + $0x1], 1 }
 0x529   :  { %947 = vsyncpa [#allocation6], 1 }
 0x52a   :  { %948 = vsyncpa [#allocation4], 1 }
 0x52b   :  { %950 = vsyncpa [#allocation4 + $0x1], 1 }

// kernel: tpu_custom_call.1
= control target key start
LH: loop header
LB: loop body
LE: loop exit
PB: predicated region body
PF: predicated region fallthrough
CT: control target
= control target key end

     0   :  { %10 = vsyncpa [#allocation3], 0  ;;  %s1728_s0 = inlined_call_operand.vmem [shape: bf16[64,16], index: 0, kind: input, shape index: {}]   ;;  %s1729_s1 = inlined_call_operand.vmem [shape: bf16[16,128], index: 1, kind: input, shape index: {}]   ;;  %s1730_s2 = inlined_call_operand.hbm [shape: bf16[4,128,128], index: 2, kind: input, shape index: {}]   ;;  %s1731_s3 = inlined_call_operand.hbm [shape: bf16[128,128], index: 3, kind: input, shape index: {}]   ;;  %s1732_s4 = inlined_call_operand.vmem [shape: f32[8,128], index: 4, kind: input, shape index: {}]   ;;  %s1733_s5 = inlined_call_operand.hbm [shape: bf16[64,128], index: 5, kind: output, shape index: {}]  }
   0x1   :  { %11 = vsyncpa [#allocation6], 0 }
   0x2   :  { %12 = vsyncpa [#allocation4], 0 }
   0x3   :  { %14 = vsyncpa [#allocation4 + $0x1], 0  ;;  %s1509_s18 = smov 0   ;;  %s1511_s19 = smov 0  }
   0x4   :  { %s1513_s20 = smov 0   ;;  %s1515_s21 = smov 0  }
   0x5 LB: > { %s1530_s22 = sadd.s32 4294967295, %s1468_s21   ;;  %s1007_s23 = sadd.s32 4294967294, %s1468_s21   ;;  %s1468_s21 = sphi %s1515_s21, %s1747_s21   ;;  %s1464_s20 = sphi %s1513_s20, %s1746_s20   ;;  %s1460_s19 = sphi %s1511_s19, %s1745_s19   ;;  %s1456_s18 = sphi %s1509_s18, %s1744_s18  }
   0x6   : > { %s1534_s24 = sadd.s32 1, %s1468_s21   ;;  %s137_s25 = sadd.s32 1, %s1464_s20 }
   0x7   : > { %s134_s26 = ssub.s32 %s1468_s21, %s1534_s24  ;;  %p147_p0 = scmp.ne.s32.totalorder %s1464_s20, %s1460_s19 }
   0x8   : > { %p135_p1 = scmp.eq.s32.totalorder %s134_s26, 0  ;;  %p148_p2 = scmp.eq.s32.totalorder %s1530_s22, 3 }
   0x9   : > { %p153_p3 = scmp.ne.s32.totalorder %s1460_s19, %s1456_s18  ;;  %p154_p4 = scmp.eq.s32.totalorder %s1007_s23, 3 }
   0xa   : > { %s1545_s27 = scalar_select %p135_p1, %s1464_s20, %s137_s25  }
   0xb   : > { %p1547_p5 = por %p148_p2, %p147_p0  ;;  %p1551_p6 = por %p154_p4, %p153_p3 }
   0xc   : > { %p1008_p7 = scmp.ge.s32.totalorder %s1468_s21, 1  ;;  %p161_p8 = scmp.lt.s32.totalorder %s1468_s21, 5 }
   0xd   : > { %s1736_s29 = scalar_select %p1551_p6, 1, 0 }
   0xe   : > { %p1734_p9 = scmp.eq.s32.totalorder %s1530_s22, 0  ;;  %p1558_p10 = pnand %p1008_p7, %p161_p8 }
   0xf   : > { %s1470_s6 = smov [#allocation2]   ;;  %s1471_s9 = smov [#allocation5]  }
  0x10   : > { %s176_s7 = sshll.u32 %s1470_s6, 4  ;;  %p1246_p11 = pneg %p1558_p10  ;;  %s177_s7 = int_to_ptr.vmem [resolvable:$true] %s176_s7 }
  0x11   : > { %s189_s10 = sshll.u32 %s1471_s9, 4  ;;  %s1359_s11 = scalar_lea.vmem %s177_s7, 4096  ;;  %s190_s10 = int_to_ptr.vmem [resolvable:$true] %s189_s10 }
  0x12   : > { %p1566_p12 = pnand %p1734_p9, %p1246_p11  ;;  %p1360_p0 = scmp.ne.s32.totalorder %s177_s7, %s1359_s11 }
  0x13   : > { %p1367_p3 = scmp.lt.s32.totalorder %s177_s7, %s177_s7  ;;  %p1368_p4 = scmp.lt.s32.totalorder %s1359_s11, %s1359_s11 }
  0x14   : > { %p1350_p13 = pneg %p1566_p12 }
  0x15   : > { %p1369_p7 = por %p1368_p4, %p1367_p3 }
  0x16   : > { %p1362_p1 = pnand %p1360_p0, %p1350_p13 }
  0x18   : > { %p1363_p2 = pneg %p1362_p1 }
  0x1a   : > { %p1370_p8 = pnand %p1369_p7, %p1363_p2 }
  0x1c   : > { %1373 = shalt.err (!%p1370_p8)
}
  0x1d   : > { %s1472_s12 = smov 64   ;;  %s1473_s13 = smov 4  }
  0x1e   : > { %1249 = dma.hbm_to_vmem [thread:$0]  (!%p1566_p12), %s1730_s2, 4096, %s177_s7, [#allocation3], %s1472_s12, %s1472_s12, %s1473_s13  }
  0x1f   : > { %s1385_s16 = scalar_lea.vmem %s190_s10, 1024  ;;  %p1393_p9 = scmp.lt.s32.totalorder %s190_s10, %s190_s10 }
  0x20   : > { %p1386_p11 = scmp.ne.s32.totalorder %s190_s10, %s1385_s16  ;;  %p1394_p6 = scmp.lt.s32.totalorder %s1385_s16, %s1385_s16 }
  0x22   : > { %p1388_p0 = pnand %p1386_p11, %p1350_p13  ;;  %p1395_p3 = por %p1394_p6, %p1393_p9 }
  0x24   : > { %p1389_p1 = pneg %p1388_p0 }
  0x26   : > { %p1396_p2 = pnand %p1395_p3, %p1389_p1 }
  0x28   : > { %1399 = shalt.err (!%p1396_p2)
}
  0x29   : > { %1252 = dma.hbm_to_vmem [thread:$0]  (!%p1566_p12), %s1731_s3, 1024, %s190_s10, [#allocation6], %s1472_s12, %s1472_s12, %s1473_s13  }
  0x2a   : > { %217 = sbr.rel (%p1558_p10) target bundleno = 1304 (0x518), region = 40  ;;  %p1739_p4 = scmp.eq.s32.totalorder (!%p1558_p10), %s1530_s22, 0 }
  0x2f   : > { %1443 = dma.done.wait (%p1739_p4), [#allocation3], 4096   ;;  %p1740_p13 = pmov %p1739_p4 }
  0x30   : > { %p1741_p7 = pmov %p1739_p4 }
  0x31   : > { %1445 = vsyncadd (%p1740_p13), [#allocation3], 4294963200 }
  0x32   : > { %1447 = dma.done.wait (%p1741_p7), [#allocation6], 1024   ;;  %p1742_p6 = pmov %p1739_p4 }
  0x33   : > { %s1016_s25 = sshll.u32 %s1530_s22, 1  ;;  %v1474_v0 = vmov 0.0   ;;  %vm1475_vm0 = vmmov 0   ;;  %v1302_v1 = vld [vmem:[%s1729_s1] sm:$0xff]   ;;  %vm277_vm1 = vcmask 130048   ;;  %v1304_v3 = vld [vmem:[#allocation2 + $0x38] sm:$0xff]  }
  0x34   : > { %1449 = vsyncadd (%p1742_p6), [#allocation6], 4294966272  ;;  %1130 = vmatprep.subr.bf16.mxu0 %v1474_v0  ;;  %1132 = vmatprep.mubr.msk.bf16.mxu0 %vm1475_vm0, %v1474_v0  ;;  %p250_p9 = scmp.lt.s32.totalorder %s1016_s25, 7  ;;  %v1305_v4 = vld [vmem:[#allocation2 + $0x30] sm:$0xff]   ;;  %v1306_v5 = vld [vmem:[#allocation2 + $0x28] sm:$0xff]   ;;  %s246_s6 = sand.u32 1, %s1460_s19  }
  0x35   : > { %1136 = vmatprep.subr.bf16.mxu1 %v1474_v0  ;;  %1152 = vmatprep.mubr.msk.bf16.mxu1 %vm1475_vm0, %v1474_v0  ;;  %v1307_v6 = vld [vmem:[#allocation2 + $0x20] sm:$0xff]   ;;  %v1308_v7 = vld [vmem:[#allocation2 + $0x18] sm:$0xff]   ;;  %v1309_v8 = vld [vmem:[#allocation2 + $0x10] sm:$0xff]   ;;  %s1077_s10 = sshll.u32 %s1530_s22, 7  ;;  %s1688_s16 = scalar_lea.sflag [#allocation4], %s246_s6 }
  0x36   : > { %s1749_s25 = smov (!%p250_p9, %s1016_s25), 7  ;;  %1131 = vmatpush3.bf16.msra.mxu0 %v1302_v1  ;;  %1137 = vmatpush3.bf16.msra.mxu1 %v1304_v3  ;;  %v1310_v9 = vld [vmem:[#allocation2 + $0x8] sm:$0xff]   ;;  %v1311_v10 = vld [vmem:[#allocation2] sm:$0xff]   ;;  %v1312_v11 = vld [vmem:[#allocation2 + $0x78] sm:$0xff]   ;;  %s1684_s15 = scalar_lea.hbm %s1733_s5, %s1077_s10 }
  0x37   : > { %s1017_s26 = sshll.u32 %s1749_s25, 2  ;;  %1156 = vmatprep.subr.bf16.mxu0 %v1474_v0  ;;  %1138 = vmatprep.subr.bf16.mxu1 %v1474_v0  ;;  %v1313_v12 = vld [vmem:[#allocation2 + $0x70] sm:$0xff]   ;;  %v1314_v13 = vld [vmem:[#allocation2 + $0x68] sm:$0xff]   ;;  %v1315_v14 = vld [vmem:[#allocation2 + $0x60] sm:$0xff]   ;;  %s1476_s17 = smov [#allocation7]  }
  0x38   : > { %s253_s7 = scalar_lea.vmem %s1728_s0, %s1017_s26  ;;  %v1316_v15 = vld [vmem:[#allocation2 + $0x58] sm:$0xff]   ;;  %v1018_v16 = vld [vmem:[%s1732_s4] ss:$0 sm:$0xff]  ;;  %v1317_v26 = vld [vmem:[#allocation2 + $0x50] sm:$0xff]   ;;  %s1404_s23 = sshll.u32 %s1476_s17, 4  ;;  %s1405_s23 = int_to_ptr.vmem [resolvable:$false] %s1404_s23 }
  0x39   : > { %v1303_v2 = vld [vmem:[%s253_s7] sm:$0xff]   ;;  %v1318_v27 = vld [vmem:[#allocation2 + $0x48] sm:$0xff]   ;;  %v1320_v29 = vld [vmem:[#allocation2 + $0xb8] sm:$0xff]   ;;  %s1015_s7 = sshll.u32 %s246_s6, 3  ;;  %s1406_s25 = scalar_lea.vmem %s1405_s23, 256 }
  0x3a   : > { %1133 = vmatmul.mubr.msk.bf16.vlgmr.msra.gmra.mxu0 %vm277_vm1, %v1303_v2  ;;  %1139 = vmatpush3.bf16.msra.mxu1 %v1305_v4  ;;  %v1319_v28 = vld [vmem:[#allocation2 + $0x40] sm:$0xff]   ;;  %v1321_v30 = vld [vmem:[#allocation2 + $0xb0] sm:$0xff]   ;;  %v1322_v31 = vld [vmem:[#allocation2 + $0xa8] sm:$0xff]   ;;  %s248_s11 = scalar_lea.vmem [#allocation7], %s1015_s7 }
  0x3b   : > { %1172 = vmatprep.mubr.msk.bf16.mxu0 %vm1475_vm0, %v1474_v0  ;;  %1140 = vmatprep.subr.bf16.mxu1 %v1474_v0  ;;  %v1323_v32 = vld [vmem:[#allocation2 + $0xa0] sm:$0xff]   ;;  %v1324_v33 = vld [vmem:[#allocation2 + $0x98] sm:$0xff]   ;;  %v1325_v44 = vld [vmem:[#allocation2 + $0x90] sm:$0xff]   ;;  %s923_s12 = sshll.u32 %s248_s11, 4  ;;  %s1686_s12 = int_to_ptr.vmem [resolvable:$true] %s923_s12 }
  0x3c   : > { %1157 = vmatpush3.bf16.msra.mxu0 %v1312_v11  ;;  %v1022_v34 = vld [vmem:[%s1732_s4 + $0x1] ss:$0 sm:$0xff]  ;;  %v1326_v45 = vld [vmem:[#allocation2 + $0x88] sm:$0xff]   ;;  %v1328_v47 = vld [vmem:[#allocation2 + $0xf8] sm:$0xff]   ;;  %s1400_s22 = scalar_lea.vmem %s1686_s12, 128  ;;  %p1407_p11 = scmp.lt.s32.totalorder %s1686_s12, %s1405_s23 }
  0x3d   : > { %1158 = vmatprep.subr.bf16.mxu0 %v1474_v0  ;;  %v1327_v46 = vld [vmem:[#allocation2 + $0x80] sm:$0xff]   ;;  %v1329_v48 = vld [vmem:[#allocation2 + $0xf0] sm:$0xff]   ;;  %v1330_v49 = vld [vmem:[#allocation2 + $0xe8] sm:$0xff]   ;;  %p1401_p10 = scmp.ne.s32.totalorder %s1686_s12, %s1400_s22  ;;  %p1408_p0 = scmp.lt.s32.totalorder %s1406_s25, %s1400_s22 }
  0x3e   : > { %1141 = vmatpush3.bf16.msra.mxu1 %v1306_v5  ;;  %v1331_v50 = vld [vmem:[#allocation2 + $0xe0] sm:$0xff]   ;;  %v1332_v51 = vld [vmem:[#allocation2 + $0xd8] sm:$0xff]   ;;  %v1333_v62 = vld [vmem:[#allocation2 + $0xd0] sm:$0xff]  }
  0x3f   : > { %1142 = vmatprep.subr.bf16.mxu1 %v1474_v0  ;;  %v1031_v52 = vld [vmem:[%s1732_s4 + $0x2] ss:$0 sm:$0xff]  ;;  %v1334_v63 = vld [vmem:[#allocation2 + $0xc8] sm:$0xff]   ;;  %v1336_v2 = vld [vmem:[#allocation5 + $0x38] sm:$0xff]   ;;  %p1402_p12 = pnand %p1401_p10, %p1547_p5  ;;  %p1409_p1 = por %p1408_p0, %p1407_p11 }
  0x40   : > { %1159 = vmatpush3.bf16.msra.mxu0 %v1313_v12  ;;  %v1335_v1 = vld [vmem:[#allocation2 + $0xc0] sm:$0xff]   ;;  %v1337_v3 = vld [vmem:[#allocation5 + $0x30] sm:$0xff]   ;;  %v1338_v4 = vld [vmem:[#allocation5 + $0x28] sm:$0xff]  }
  0x41   : > { %1160 = vmatprep.subr.bf16.mxu0 %v1474_v0  ;;  %v1339_v5 = vld [vmem:[#allocation5 + $0x20] sm:$0xff]   ;;  %p1403_p8 = pneg %p1402_p12 }
  0x42   : > { %1143 = vmatpush3.bf16.msra.mxu1 %v1307_v6  ;;  %v1340_v6 = vld [vmem:[#allocation5 + $0x18] sm:$0xff]  }
  0x43   : > { %1144 = vmatprep.subr.bf16.mxu1 %v1474_v0  ;;  %p1410_p3 = pnand %p1409_p1, %p1403_p8 }
  0x44   : > { %1161 = vmatpush3.bf16.msra.mxu0 %v1314_v13 }
  0x45   : > { %1162 = vmatprep.subr.bf16.mxu0 %v1474_v0 }
  0x46   : > { %1145 = vmatpush3.bf16.msra.mxu1 %v1308_v7  ;;  %v1040_v7 = vld [vmem:[%s1732_s4 + $0x3] ss:$0 sm:$0xff] }
  0x47   : > { %1146 = vmatprep.subr.bf16.mxu1 %v1474_v0 }
  0x48   : > { %1163 = vmatpush3.bf16.msra.mxu0 %v1315_v14 }
  0x49   : > { %1164 = vmatprep.subr.bf16.mxu0 %v1474_v0 }
  0x4a   : > { %1147 = vmatpush3.bf16.msra.mxu1 %v1309_v8 }
  0x4b   : > { %1148 = vmatprep.subr.bf16.mxu1 %v1474_v0 }
  0x4c   : > { %1165 = vmatpush3.bf16.msra.mxu0 %v1316_v15 }
  0x4d   : > { %1166 = vmatprep.subr.bf16.mxu0 %v1474_v0 }
  0x4e   : > { %1149 = vmatpush3.bf16.msra.mxu1 %v1310_v9 }
  0x4f   : > { %1150 = vmatprep.subr.bf16.mxu1 %v1474_v0 }
  0x50   : > { %1167 = vmatpush3.bf16.msra.mxu0 %v1317_v26 }
  0x51   : > { %1168 = vmatprep.subr.bf16.mxu0 %v1474_v0 }
  0x52   : > { %1151 = vmatpush3.bf16.msra.mxu1 %v1311_v10 }
  0x53   : > { %1176 = vmatprep.subr.bf16.mxu1 %v1474_v0 }
  0x54   : > { %1169 = vmatpush3.bf16.msra.mxu0 %v1318_v27 }
  0x55   : > { %1170 = vmatprep.subr.bf16.mxu0 %v1474_v0 }
  0x58   : > { %1171 = vmatpush3.bf16.msra.mxu0 %v1319_v28 }
  0x59   : > { %1196 = vmatprep.subr.bf16.mxu0 %v1474_v0 }
  0xfa   : > { %v315_v17 = vpop.f32.mrf.mxu0 }
  0xfb   : > { %v316_v19 = vadd.f32 %v1018_v16, %v315_v17  ;;  %v1341_v17 = vld [vmem:[#allocation5 + $0x10] sm:$0xff]  }
  0xfc   : > { %v1134_v18 = vpop.f32.mrf.mxu0 }
  0xfd   : > { %v322_v23 = vmax.f32 %v316_v19, 0.0  ;;  %v1342_v18 = vld [vmem:[#allocation5 + $0x8] sm:$0xff]   ;;  %v1343_v19 = vld [vmem:[#allocation5] sm:$0xff]  }
  0xfe   : > { %v318_v20 = vpop.f32.mrf.mxu0 }
  0xff   : > { %v319_v21 = vadd.f32 %v1018_v16, %v318_v20  ;;  %v1049_v20 = vld [vmem:[%s1732_s4 + $0x4] ss:$0 sm:$0xff] }
 0x100   : > { %v1135_v22 = vpop.f32.mrf.mxu0 }
 0x101   : > { %v323_v24 = vmax.f32 %v319_v21, 0.0 }
 0x103   : > { %v324_v25 = vpack.c.bf16 %v323_v24, %v322_v23 }
 0x105   : > { %1153 = vmatmul.mubr.bf16.vlgmr.msra.gmra.mxu1 %v324_v25 }
 0x106   : > { %1192 = vmatprep.mubr.msk.bf16.mxu1 %vm1475_vm0, %v1474_v0  ;;  %1177 = vmatpush3.bf16.msra.mxu1 %v1320_v29 }
 0x107   : > { %1178 = vmatprep.subr.bf16.mxu1 %v1474_v0 }
 0x10a   : > { %1179 = vmatpush3.bf16.msra.mxu1 %v1321_v30 }
 0x10b   : > { %1180 = vmatprep.subr.bf16.mxu1 %v1474_v0 }
 0x10e   : > { %1181 = vmatpush3.bf16.msra.mxu1 %v1322_v31 }
 0x10f   : > { %1182 = vmatprep.subr.bf16.mxu1 %v1474_v0 }
 0x112   : > { %1183 = vmatpush3.bf16.msra.mxu1 %v1323_v32 }
 0x113   : > { %1184 = vmatprep.subr.bf16.mxu1 %v1474_v0 }
 0x116   : > { %1185 = vmatpush3.bf16.msra.mxu1 %v1324_v33 }
 0x117   : > { %1186 = vmatprep.subr.bf16.mxu1 %v1474_v0 }
 0x11a   : > { %1187 = vmatpush3.bf16.msra.mxu1 %v1325_v44 }
 0x11b   : > { %1188 = vmatprep.subr.bf16.mxu1 %v1474_v0 }
 0x11e   : > { %1189 = vmatpush3.bf16.msra.mxu1 %v1326_v45 }
 0x11f   : > { %1190 = vmatprep.subr.bf16.mxu1 %v1474_v0 }
 0x122   : > { %1191 = vmatpush3.bf16.msra.mxu1 %v1327_v46 }
 0x123   : > { %1216 = vmatprep.subr.bf16.mxu1 %v1474_v0 }
 0x1c5   : > { %v428_v35 = vpop.f32.mrf.mxu1 }
 0x1c6   : > { %v429_v37 = vadd.f32 %v1022_v34, %v428_v35 }
 0x1c7   : > { %v1154_v36 = vpop.f32.mrf.mxu1 }
 0x1c8   : > { %v435_v41 = vmax.f32 %v429_v37, 0.0  ;;  %v1067_v37 = vld [vmem:[%s1732_s4 + $0x6] ss:$0 sm:$0xff] }
 0x1c9   : > { %v431_v38 = vpop.f32.mrf.mxu1 }
 0x1ca   : > { %v432_v39 = vadd.f32 %v1022_v34, %v431_v38 }
 0x1cb   : > { %v1155_v40 = vpop.f32.mrf.mxu1 }
 0x1cc   : > { %v436_v42 = vmax.f32 %v432_v39, 0.0 }
 0x1ce   : > { %v437_v43 = vpack.c.bf16 %v436_v42, %v435_v41 }
 0x1d0   : > { %1173 = vmatmul.mubr.bf16.vlgmr.msra.gmra.mxu0 %v437_v43 }
 0x1d1   : > { %1212 = vmatprep.mubr.msk.bf16.mxu0 %vm1475_vm0, %v1474_v0  ;;  %1197 = vmatpush3.bf16.msra.mxu0 %v1328_v47 }
 0x1d2   : > { %1198 = vmatprep.subr.bf16.mxu0 %v1474_v0 }
 0x1d5   : > { %1199 = vmatpush3.bf16.msra.mxu0 %v1329_v48 }
 0x1d6   : > { %1200 = vmatprep.subr.bf16.mxu0 %v1474_v0 }
 0x1d9   : > { %1201 = vmatpush3.bf16.msra.mxu0 %v1330_v49 }
 0x1da   : > { %1202 = vmatprep.subr.bf16.mxu0 %v1474_v0 }
 0x1dd   : > { %1203 = vmatpush3.bf16.msra.mxu0 %v1331_v50 }
 0x1de   : > { %1204 = vmatprep.subr.bf16.mxu0 %v1474_v0 }
 0x1e1   : > { %1205 = vmatpush3.bf16.msra.mxu0 %v1332_v51 }
 0x1e2   : > { %1206 = vmatprep.subr.bf16.mxu0 %v1474_v0 }
 0x1e5   : > { %1207 = vmatpush3.bf16.msra.mxu0 %v1333_v62 }
 0x1e6   : > { %1208 = vmatprep.subr.bf16.mxu0 %v1474_v0 }
 0x1e9   : > { %1209 = vmatpush3.bf16.msra.mxu0 %v1334_v63 }
 0x1ea   : > { %1210 = vmatprep.subr.bf16.mxu0 %v1474_v0 }
 0x1ed   : > { %1211 = vmatpush3.bf16.msra.mxu0 %v1335_v1 }
 0x290   : > { %v542_v53 = vpop.f32.mrf.mxu0 }
 0x291   : > { %v543_v55 = vadd.f32 %v1031_v52, %v542_v53 }
 0x292   : > { %v1174_v54 = vpop.f32.mrf.mxu0 }
 0x293   : > { %v549_v59 = vmax.f32 %v543_v55, 0.0 }
 0x294   : > { %v545_v56 = vpop.f32.mrf.mxu0 }
 0x295   : > { %v546_v57 = vadd.f32 %v1031_v52, %v545_v56 }
 0x296   : > { %v1175_v58 = vpop.f32.mrf.mxu0 }
 0x297   : > { %v550_v60 = vmax.f32 %v546_v57, 0.0 }
 0x299   : > { %v551_v61 = vpack.c.bf16 %v550_v60, %v549_v59 }
 0x29b   : > { %1193 = vmatmul.mubr.bf16.vlgmr.msra.gmra.mxu1 %v551_v61 }
 0x29c   : > { %1232 = vmatprep.mubr.msk.bf16.mxu1 %vm1475_vm0, %v1474_v0  ;;  %1217 = vmatpush3.bf16.msra.mxu1 %v1336_v2 }
 0x29d   : > { %1218 = vmatprep.subr.bf16.mxu1 %v1474_v0 }
 0x2a0   : > { %1219 = vmatpush3.bf16.msra.mxu1 %v1337_v3 }
 0x2a1   : > { %1220 = vmatprep.subr.bf16.mxu1 %v1474_v0 }
 0x2a4   : > { %1221 = vmatpush3.bf16.msra.mxu1 %v1338_v4 }
 0x2a5   : > { %1222 = vmatprep.subr.bf16.mxu1 %v1474_v0 }
 0x2a8   : > { %1223 = vmatpush3.bf16.msra.mxu1 %v1339_v5 }
 0x2a9   : > { %1224 = vmatprep.subr.bf16.mxu1 %v1474_v0 }
 0x2ac   : > { %1225 = vmatpush3.bf16.msra.mxu1 %v1340_v6 }
 0x2ad   : > { %1226 = vmatprep.subr.bf16.mxu1 %v1474_v0 }
 0x2b0   : > { %1227 = vmatpush3.bf16.msra.mxu1 %v1341_v17 }
 0x2b1   : > { %1228 = vmatprep.subr.bf16.mxu1 %v1474_v0 }
 0x2b4   : > { %1229 = vmatpush3.bf16.msra.mxu1 %v1342_v18 }
 0x2b5   : > { %1230 = vmatprep.subr.bf16.mxu1 %v1474_v0  ;;  %v1058_v0 = vld [vmem:[%s1732_s4 + $0x5] ss:$0 sm:$0xff] }
 0x2b8   : > { %1231 = vmatpush3.bf16.msra.mxu1 %v1343_v19 }
 0x35b   : > { %v656_v8 = vpop.f32.mrf.mxu1 }
 0x35c   : > { %v657_v10 = vadd.f32 %v1040_v7, %v656_v8 }
 0x35d   : > { %v1194_v9 = vpop.f32.mrf.mxu1 }
 0x35e   : > { %v663_v14 = vmax.f32 %v657_v10, 0.0 }
 0x35f   : > { %v659_v11 = vpop.f32.mrf.mxu1 }
 0x360   : > { %v660_v12 = vadd.f32 %v1040_v7, %v659_v11 }
 0x361   : > { %v1195_v13 = vpop.f32.mrf.mxu1 }
 0x362   : > { %v664_v15 = vmax.f32 %v660_v12, 0.0 }
 0x364   : > { %v665_v16 = vpack.c.bf16 %v664_v15, %v663_v14 }
 0x366   : > { %1213 = vmatmul.mubr.bf16.vlgmr.msra.gmra.mxu0 %v665_v16 }
 0x426   : > { %v770_v21 = vpop.f32.mrf.mxu0 }
 0x427   : > { %v771_v23 = vadd.f32 %v1049_v20, %v770_v21 }
 0x428   : > { %v1214_v22 = vpop.f32.mrf.mxu0 }
 0x429   : > { %v777_v27 = vmax.f32 %v771_v23, 0.0 }
 0x42a   : > { %v773_v24 = vpop.f32.mrf.mxu0 }
 0x42b   : > { %v774_v25 = vadd.f32 %v1049_v20, %v773_v24 }
 0x42c   : > { %v1215_v26 = vpop.f32.mrf.mxu0 }
 0x42d   : > { %v778_v28 = vmax.f32 %v774_v25, 0.0 }
 0x42f   : > { %v779_v29 = vpack.c.bf16 %v778_v28, %v777_v27 }
 0x431   : > { %1233 = vmatmul.mubr.bf16.vlgmr.msra.gmra.mxu1 %v779_v29 }
 0x4f1   : > { %v883_v30 = vpop.f32.mrf.mxu1 }
 0x4f2   : > { %v884_v31 = vadd.f32 %v1058_v0, %v883_v30 }
 0x4f3   : > { %v1234_v32 = vpop.f32.mrf.mxu1 }
 0x4f4   : > { %1344 = vtanh.f32 %v884_v31 }
 0x4f5   : > { %v886_v33 = vpop.f32.mrf.mxu1 }
 0x4f6   : > { %v887_v34 = vadd.f32 %v1058_v0, %v886_v33 }
 0x4f7   : > { %v1235_v35 = vpop.f32.mrf.mxu1 }
 0x4f8   : > { %1346 = vtanh.f32 %v887_v34 }
 0x501   : > { %v1345_v36 = vpop.eup %1344 }
 0x502   : > { %v897_v39 = vmul.f32 %v1345_v36, %v1067_v37 }
 0x505   : > { %v1347_v38 = vpop.eup %1346 }
 0x506   : > { %v898_v40 = vmul.f32 %v1347_v38, %v1067_v37 }
 0x508   : > { %v1081_v41 = vpack.c.bf16 %v898_v40, %v897_v39 }
 0x50a   : > { %1082 = vst [vmem:[%s248_s11] sm:$0xff] %v1081_v41  }
 0x50b   : > { %1413 = shalt.err (!%p1410_p3)
}
 0x50c   : > { %s1414_s26 = scalar_lea.hbm %s1684_s15, 128  ;;  %s1418_s7 = scalar_lea.hbm %s1733_s5, 512 }
 0x50d   : > { %p1415_p2 = scmp.ne.s32.totalorder %s1684_s15, %s1414_s26  ;;  %p1419_p7 = scmp.lt.s32.totalorder %s1684_s15, %s1733_s5 }
 0x50e   : > { %p1420_p6 = scmp.lt.s32.totalorder %s1418_s7, %s1414_s26 }
 0x50f   : > { %p1416_p4 = pnand %p1415_p2, %p1547_p5 }
 0x510   : > { %p1421_p9 = por %p1420_p6, %p1419_p7 }
 0x511   : > { %p1417_p13 = pneg %p1416_p4 }
 0x513   : > { %p1422_p10 = pnand %p1421_p9, %p1417_p13 }
 0x515   : > { %1425 = shalt.err (!%p1422_p10)
}
 0x516   : > { %s1477_s10 = smov 64   ;;  %s1478_s11 = smov 4  }
 0x517   : > { %1244 = dma.vmem_to_hbm [thread:$0]  (%p1547_p5), %s1686_s12, 128, %s1684_s15, %s1688_s16, %s1477_s10, %s1477_s10, %s1478_s11  }
 0x518 PF: > { %p1261_p12 = scmp.ge.s32.totalorder %s1468_s21, 2  ;;  %s938_s13 = sand.u32 1, %s1456_s18  }
 0x519   : > { %p1743_p8 = scmp.ne.s32.totalorder %s1736_s29, 0  ;;  %s939_s14 = scalar_lea.sflag [#allocation4], %s938_s13 }
 0x51b   : > { %p1254_p11 = pnand %p1261_p12, %p1743_p8 }
 0x51d   : > { %p1255_p0 = pneg %p1254_p11 }
 0x51f   : > { %1451 = dma.done.wait (%p1255_p0), %s939_s14, 128  }
 0x520   : > { %1453 = vsyncadd (%p1255_p0), %s939_s14, 4294967168  ;;  %p17_p1 = scmp.ge.s32.totalorder %s1534_s24, 6   ;;  %s1744_s18 = smov %s1460_s19 }
 0x521   : > { %s1745_s19 = smov %s1464_s20  ;;  %s1746_s20 = smov %s1545_s27 }
 0x522   : > { %s1747_s21 = smov %s1534_s24  ;;  %19 = sbr.rel (!%p17_p1) target bundleno = 5 (0x5), region = 87 }
 0x527   :  { %944 = vsyncpa [#allocation3], 1 }
 0x528   :  { %946 = vsyncpa [#allocation3 + $0x1], 1 }
 0x529   :  { %947 = vsyncpa [#allocation6], 1 }
 0x52a   :  { %948 = vsyncpa [#allocation4], 1 }
 0x52b   :  { %950 = vsyncpa [#allocation4 + $0x1], 1 }

</bundles_post_ra>
